<compile_context>
chip_gen: v6e
topology: v6e:2x2x1
jax: 0.10.0
libtpu: 0.0.40
codegen_flags: <defaults>
</compile_context>

<pallas_src>
import functools

import jax
import jax.numpy as jnp
from jax import lax
from jax.experimental import pallas as pl
from jax.experimental.pallas import tpu as pltpu

_TWO_PI = 6.283185307179586

# lowbias32 hash constants (expressed as signed int32 where needed).
_MIX_M1 = 0x7FEB352D
_MIX_M2 = -2073418101        # 0x846CA68B as int32
_GOLDEN = -1640531527        # 0x9E3779B9 as int32
_ONE_EXPONENT = 0x3F800000   # bit pattern of float32 1.0


def _srl(v, amount):
    """Logical right shift on int32 values."""
    return lax.shift_right_logical(v, jnp.int32(amount))


def _mix32(v):
    """lowbias32 integer hash finalizer (bijective on int32)."""
    v = v ^ _srl(v, 16)
    v = v * _MIX_M1
    v = v ^ _srl(v, 15)
    v = v * _MIX_M2
    v = v ^ _srl(v, 16)
    return v


def _bits_to_unit(bits):
    """Map random int32 bits to a float32 uniform in [1.0, 2.0)."""
    mant = _srl(bits, 9) | _ONE_EXPONENT
    return lax.bitcast_convert_type(mant, jnp.float32)


def _gaussian_noise_kernel(key_ref, x_ref, o_ref, *, sigma, tile_r, width):
    half_r = tile_r // 2
    i = pl.program_id(0)

    # Counter-based PRNG: one counter per Box-Muller pair, globally unique
    # across tiles, so the grid axis can be "parallel" and results are
    # deterministic regardless of execution order.
    row = lax.broadcasted_iota(jnp.int32, (half_r, width), 0)
    col = lax.broadcasted_iota(jnp.int32, (half_r, width), 1)
    pair_idx = (i * half_r + row) * width + col
    key = key_ref[0]

    c = pair_idx * 2
    bits1 = _mix32(c ^ key)          # stream A (even counters)
    bits2 = _mix32((c + 1) ^ key)    # stream B (odd counters)

    u1 = 2.0 - _bits_to_unit(bits1)                # (0, 1] -> safe for log
    theta = _TWO_PI * (_bits_to_unit(bits2) - 1.0)  # [0, 2*pi)

    r = jnp.sqrt(-2.0 * jnp.log(u1))
    n_top = r * jnp.cos(theta)   # both Box-Muller outputs are used:
    n_bot = r * jnp.sin(theta)   # 1 PRNG pair + ~2 EUP ops per element

    sig = jnp.float32(sigma)
    x_top = x_ref[0:half_r, :].astype(jnp.float32)
    x_bot = x_ref[half_r:tile_r, :].astype(jnp.float32)
    o_ref[0:half_r, :] = (x_top + (sig * x_top) * n_top).astype(o_ref.dtype)
    o_ref[half_r:tile_r, :] = (x_bot + (sig * x_bot) * n_bot).astype(o_ref.dtype)


def _choose_tiling(n):
    """Pick (width, tile_rows, padded_rows): lane-dense ~0.5 MiB f32 blocks."""
    width = 128
    for w in (512, 256, 128):
        if n % w == 0:
            width = w
            break
    rows = -(-n // width)
    # ~0.5 MiB f32 per block; rows multiple of 16 so each Box-Muller half
    # stays sublane (8)-aligned, also fine for bf16 (16, 128) tiling.
    target_rows = max(16, ((1 << 19) // (width * 4)) // 16 * 16)
    if rows <= target_rows:
        tile_r = ((rows + 15) // 16) * 16
    else:
        tile_r = target_rows
    padded_rows = -(-rows // tile_r) * tile_r
    return width, tile_r, padded_rows


def gaussian_noise(x, *, sigma=0.1, seed=0, training=True,
                   is_relative_detach=True):
    """Forward pass of GaussianNoise: x + sigma * x * N(0, 1) when training."""
    # TODO(synk): is_relative_detach only changes autodiff (detach of the
    # scale), not the forward values, so it is accepted but unused here.
    del is_relative_detach
    if (not training) or sigma == 0:
        return x

    orig_shape = x.shape
    orig_dtype = x.dtype
    n = int(x.size)

    width, tile_r, padded_rows = _choose_tiling(n)
    padded_n = padded_rows * width

    flat = x.reshape(-1)
    if padded_n != n:                         # pad only the ragged case
        flat = jnp.pad(flat, (0, padded_n - n))
    x2d = flat.reshape(padded_rows, width)

    # Hash the seed once outside the kernel; the kernel mixes it with the
    # globally-unique per-element counter, so every tile draws fresh noise.
    key_arr = _mix32(jnp.asarray(seed, dtype=jnp.int32) ^ _GOLDEN).reshape(1)

    grid = (padded_rows // tile_r,)
    kernel = functools.partial(_gaussian_noise_kernel, sigma=float(sigma),
                               tile_r=tile_r, width=width)

    itemsize = jnp.dtype(orig_dtype).itemsize
    cost = pl.CostEstimate(
        flops=12 * padded_n,
        transcendentals=2 * padded_n,
        bytes_accessed=2 * padded_n * itemsize,
    )

    out2d = pl.pallas_call(
        kernel,
        out_shape=jax.ShapeDtypeStruct(x2d.shape, orig_dtype),
        grid_spec=pltpu.PrefetchScalarGridSpec(
            num_scalar_prefetch=1,
            grid=grid,
            in_specs=[pl.BlockSpec((tile_r, width), lambda i, key: (i, 0))],
            out_specs=pl.BlockSpec((tile_r, width), lambda i, key: (i, 0)),
        ),
        compiler_params=pltpu.CompilerParams(
            dimension_semantics=("parallel",)),
        cost_estimate=cost,
    )(key_arr, x2d)

    if padded_n != n:
        return out2d.reshape(-1)[:n].reshape(orig_shape)
    return out2d.reshape(orig_shape)


if __name__ == "__main__":
    key = jax.random.PRNGKey(0)
    # NCHW input, consistent with a conv autoencoder feature map.
    x = jax.random.normal(key, (2, 4, 16, 16), dtype=jnp.float32)

    sigma = 0.1

    # Training path (noise injected inside the Pallas kernel).
    y_train = jax.block_until_ready(
        gaussian_noise(x, sigma=sigma, seed=0, training=True))

    # Same seed -> deterministic; eval path is the identity.
    y_train2 = jax.block_until_ready(
        gaussian_noise(x, sigma=sigma, seed=0, training=True))
    y_eval = jax.block_until_ready(
        gaussian_noise(x, sigma=sigma, seed=0, training=False))

    assert y_train.shape == x.shape and y_train.dtype == x.dtype
    assert bool(jnp.all(jnp.isfinite(y_train)))
    assert bool(jnp.allclose(y_train, y_train2))
    assert bool(jnp.allclose(y_eval, x))

    # Noise is relative: (out - x) / (sigma * x) should look like N(0, 1).
    rel = (y_train - x) / (sigma * x)
    rel_std = float(jnp.std(rel))
    assert 0.5 < rel_std < 2.0, f"unexpected noise std {rel_std}"

    print("KERNEL_OK")
</pallas_src>

<mosaic_0001>
module attributes {stable_mosaic.version = 11 : i64} {
  func.func @_gaussian_noise_kernel(%arg0: i32, %arg1: memref<1xi32, #tpu.memory_space<smem>>, %arg2: memref<16x512xf32, #tpu.memory_space<vmem>>, %arg3: memref<16x512xf32, #tpu.memory_space<vmem>>) attributes {dimension_semantics = [#tpu.dimension_semantics<parallel>], iteration_bounds = array<i64: 1>, scalar_prefetch = 1 : i64, scratch_operands = 0 : i64, tpu.core_type = #tpu.core_type<tc>, window_params = [{transform_indices = @transform_0, window_bounds = array<i64: 16, 512>}, {transform_indices = @transform_1, window_bounds = array<i64: 16, 512>}]} {
    %0 = tpu.iota {dimensions = array<i32: 0>} : vector<8x512xi32>
    %1 = tpu.iota {dimensions = array<i32: 1>} : vector<8x512xi32>
    %c8_i32 = arith.constant 8 : i32
    %2 = arith.muli %arg0, %c8_i32 : i32
    %3 = vector.broadcast %2 : i32 to vector<8x512xi32>
    %4 = arith.addi %3, %0 : vector<8x512xi32>
    %c512_i32 = arith.constant 512 : i32
    %5 = vector.broadcast %c512_i32 : i32 to vector<8x512xi32>
    %6 = arith.muli %4, %5 : vector<8x512xi32>
    %7 = arith.addi %6, %1 : vector<8x512xi32>
    %c0 = arith.constant 0 : index
    %8 = memref.load %arg1[%c0] : memref<1xi32, #tpu.memory_space<smem>>
    %c2_i32 = arith.constant 2 : i32
    %9 = vector.broadcast %c2_i32 : i32 to vector<8x512xi32>
    %10 = arith.muli %7, %9 : vector<8x512xi32>
    %11 = vector.broadcast %8 : i32 to vector<8x512xi32>
    %12 = arith.xori %10, %11 : vector<8x512xi32>
    %c16_i32 = arith.constant 16 : i32
    %13 = vector.broadcast %c16_i32 : i32 to vector<8x512xi32>
    %14 = arith.shrui %12, %13 : vector<8x512xi32>
    %15 = arith.xori %12, %14 : vector<8x512xi32>
    %c2146121005_i32 = arith.constant 2146121005 : i32
    %16 = vector.broadcast %c2146121005_i32 : i32 to vector<8x512xi32>
    %17 = arith.muli %15, %16 : vector<8x512xi32>
    %c15_i32 = arith.constant 15 : i32
    %18 = vector.broadcast %c15_i32 : i32 to vector<8x512xi32>
    %19 = arith.shrui %17, %18 : vector<8x512xi32>
    %20 = arith.xori %17, %19 : vector<8x512xi32>
    %c-2073418101_i32 = arith.constant -2073418101 : i32
    %21 = vector.broadcast %c-2073418101_i32 : i32 to vector<8x512xi32>
    %22 = arith.muli %20, %21 : vector<8x512xi32>
    %c16_i32_0 = arith.constant 16 : i32
    %23 = vector.broadcast %c16_i32_0 : i32 to vector<8x512xi32>
    %24 = arith.shrui %22, %23 : vector<8x512xi32>
    %25 = arith.xori %22, %24 : vector<8x512xi32>
    %c1_i32 = arith.constant 1 : i32
    %26 = vector.broadcast %c1_i32 : i32 to vector<8x512xi32>
    %27 = arith.addi %10, %26 : vector<8x512xi32>
    %28 = vector.broadcast %8 : i32 to vector<8x512xi32>
    %29 = arith.xori %27, %28 : vector<8x512xi32>
    %c16_i32_1 = arith.constant 16 : i32
    %30 = vector.broadcast %c16_i32_1 : i32 to vector<8x512xi32>
    %31 = arith.shrui %29, %30 : vector<8x512xi32>
    %32 = arith.xori %29, %31 : vector<8x512xi32>
    %c2146121005_i32_2 = arith.constant 2146121005 : i32
    %33 = vector.broadcast %c2146121005_i32_2 : i32 to vector<8x512xi32>
    %34 = arith.muli %32, %33 : vector<8x512xi32>
    %c15_i32_3 = arith.constant 15 : i32
    %35 = vector.broadcast %c15_i32_3 : i32 to vector<8x512xi32>
    %36 = arith.shrui %34, %35 : vector<8x512xi32>
    %37 = arith.xori %34, %36 : vector<8x512xi32>
    %c-2073418101_i32_4 = arith.constant -2073418101 : i32
    %38 = vector.broadcast %c-2073418101_i32_4 : i32 to vector<8x512xi32>
    %39 = arith.muli %37, %38 : vector<8x512xi32>
    %c16_i32_5 = arith.constant 16 : i32
    %40 = vector.broadcast %c16_i32_5 : i32 to vector<8x512xi32>
    %41 = arith.shrui %39, %40 : vector<8x512xi32>
    %42 = arith.xori %39, %41 : vector<8x512xi32>
    %c9_i32 = arith.constant 9 : i32
    %43 = vector.broadcast %c9_i32 : i32 to vector<8x512xi32>
    %44 = arith.shrui %25, %43 : vector<8x512xi32>
    %c1065353216_i32 = arith.constant 1065353216 : i32
    %45 = vector.broadcast %c1065353216_i32 : i32 to vector<8x512xi32>
    %46 = arith.ori %44, %45 : vector<8x512xi32>
    %47 = tpu.bitcast %46 : vector<8x512xi32> -> vector<8x512xf32>
    %cst = arith.constant 2.000000e+00 : f32
    %48 = vector.broadcast %cst : f32 to vector<8x512xf32>
    %49 = arith.subf %48, %47 : vector<8x512xf32>
    %c9_i32_6 = arith.constant 9 : i32
    %50 = vector.broadcast %c9_i32_6 : i32 to vector<8x512xi32>
    %51 = arith.shrui %42, %50 : vector<8x512xi32>
    %c1065353216_i32_7 = arith.constant 1065353216 : i32
    %52 = vector.broadcast %c1065353216_i32_7 : i32 to vector<8x512xi32>
    %53 = arith.ori %51, %52 : vector<8x512xi32>
    %54 = tpu.bitcast %53 : vector<8x512xi32> -> vector<8x512xf32>
    %cst_8 = arith.constant 1.000000e+00 : f32
    %55 = vector.broadcast %cst_8 : f32 to vector<8x512xf32>
    %56 = arith.subf %54, %55 : vector<8x512xf32>
    %cst_9 = arith.constant 6.28318548 : f32
    %57 = vector.broadcast %cst_9 : f32 to vector<8x512xf32>
    %58 = arith.mulf %57, %56 : vector<8x512xf32>
    %59 = math.log %49 : vector<8x512xf32>
    %cst_10 = arith.constant -2.000000e+00 : f32
    %60 = vector.broadcast %cst_10 : f32 to vector<8x512xf32>
    %61 = arith.mulf %60, %59 : vector<8x512xf32>
    %62 = math.sqrt %61 : vector<8x512xf32>
    %63 = math.cos %58 : vector<8x512xf32>
    %64 = arith.mulf %62, %63 : vector<8x512xf32>
    %65 = math.sin %58 : vector<8x512xf32>
    %66 = arith.mulf %62, %65 : vector<8x512xf32>
    %c0_11 = arith.constant 0 : index
    %c0_12 = arith.constant 0 : index
    %67 = vector.load %arg2[%c0_11, %c0_12] : memref<16x512xf32, #tpu.memory_space<vmem>>, vector<8x512xf32>
    %c8 = arith.constant 8 : index
    %c0_13 = arith.constant 0 : index
    %68 = vector.load %arg2[%c8, %c0_13] : memref<16x512xf32, #tpu.memory_space<vmem>>, vector<8x512xf32>
    %cst_14 = arith.constant 1.000000e-01 : f32
    %69 = vector.broadcast %cst_14 : f32 to vector<8x512xf32>
    %70 = arith.mulf %69, %67 : vector<8x512xf32>
    %71 = arith.mulf %70, %64 : vector<8x512xf32>
    %72 = arith.addf %67, %71 : vector<8x512xf32>
    %c0_15 = arith.constant 0 : index
    %c0_16 = arith.constant 0 : index
    %73 = vector.load %arg3[%c0_15, %c0_16] : memref<16x512xf32, #tpu.memory_space<vmem>>, vector<8x512xf32>
    tpu.vector_store %arg3[%c0_15, %c0_16], %72 {strides = array<i32>} : memref<16x512xf32, #tpu.memory_space<vmem>>, vector<8x512xf32>,
    %cst_17 = arith.constant 1.000000e-01 : f32
    %74 = vector.broadcast %cst_17 : f32 to vector<8x512xf32>
    %75 = arith.mulf %74, %68 : vector<8x512xf32>
    %76 = arith.mulf %75, %66 : vector<8x512xf32>
    %77 = arith.addf %68, %76 : vector<8x512xf32>
    %c8_18 = arith.constant 8 : index
    %c0_19 = arith.constant 0 : index
    %78 = vector.load %arg3[%c8_18, %c0_19] : memref<16x512xf32, #tpu.memory_space<vmem>>, vector<8x512xf32>
    tpu.vector_store %arg3[%c8_18, %c0_19], %77 {strides = array<i32>} : memref<16x512xf32, #tpu.memory_space<vmem>>, vector<8x512xf32>,
    return
  }
  func.func @transform_0(%arg0: i32, %arg1: memref<1xi32, #tpu.memory_space<smem>>) -> (i32, i32) {
    %c0_i32 = arith.constant 0 : i32
    %c0_i32_0 = arith.constant 0 : i32
    return %arg0, %c0_i32 : i32, i32
  }
  func.func @transform_1(%arg0: i32, %arg1: memref<1xi32, #tpu.memory_space<smem>>) -> (i32, i32) {
    %c0_i32 = arith.constant 0 : i32
    %c0_i32_0 = arith.constant 0 : i32
    return %arg0, %c0_i32 : i32, i32
  }
}

</mosaic_0001>

<bundles_post_ra>
// kernel: tpu_custom_call.1
= control target key start
LH: loop header
LB: loop body
LE: loop exit
PB: predicated region body
PF: predicated region fallthrough
CT: control target
= control target key end

     0   :  { %8 = vsyncpa [#allocation5], 0  ;;  %s1688_s0 = inlined_call_operand.<no memory space> [shape: s32[1], index: 0, kind: input, shape index: {}]   ;;  %s1689_s1 = inlined_call_operand.hbm [shape: f32[16,512], index: 1, kind: input, shape index: {}]   ;;  %s1690_s2 = inlined_call_operand.hbm [shape: f32[16,512], index: 2, kind: output, shape index: {}]  }
   0x1   :  { %9 = vsyncpa [#allocation6], 0  ;;  %s1229_s9 = smov [#allocation4]  }
   0x2   :  { %s15_s10 = sshll.u32 %s1229_s9, 4  ;;  %s16_s10 = int_to_ptr.vmem [resolvable:$true] %s15_s10 }
   0x3   :  { %s1193_s11 = scalar_lea.vmem %s16_s10, 1024  ;;  %p1198_p1 = scmp.lt.s32.totalorder %s16_s10, %s16_s10 }
   0x4   :  { %p1194_p0 = scmp.ne.s32.totalorder %s16_s10, %s1193_s11  ;;  %p1199_p2 = scmp.lt.s32.totalorder %s1193_s11, %s1193_s11 }
   0x6   :  { %p1200_p3 = por %p1199_p2, %p1198_p1 }
   0x8   :  { %p1201_p4 = pnand %p1200_p3, %p1194_p0 }
   0xa   :  { %1204 = shalt.err (!%p1201_p4)
}
   0xb   :  { %s1230_s12 = smov 512   ;;  %s1231_s13 = smov 32  }
   0xc   :  { %21 = dma.hbm_to_vmem [thread:$0]  %s1689_s1, 1024, %s16_s10, [#allocation5], %s1230_s12, %s1230_s12, %s1231_s13  }
   0xd   :  { %1225 = dma.done.wait [#allocation5], 1024  }
   0xe   :  { %1226 = vsyncadd [#allocation5], 4294966272  ;;  %v25_v0 = vlaneseq  ;;  %v45_v15 = vstv %s1688_s0  ;;  %s1238_s0 = smov [#allocation7]  }
   0xf   :  { %s1079_s1 = sshll.u32 %s1238_s0, 4  ;;  %s1080_s1 = int_to_ptr.vmem [resolvable:$true] %s1079_s1 }
  0x10   :  { %v26_v1 = vshrl.u32 %v25_v0, 7  ;;  %v28_v2 = vand.u32 127, %v25_v0  ;;  %s1205_s18 = scalar_lea.vmem %s1080_s1, 1024  ;;  %p1210_p6 = scmp.lt.s32.totalorder %s1080_s1, %s1080_s1 }
  0x11   :  { %p1206_p5 = scmp.ne.s32.totalorder %s1080_s1, %s1205_s18  ;;  %p1211_p7 = scmp.lt.s32.totalorder %s1205_s18, %s1205_s18 }
  0x12   :  { %v29_v3 = vadd.s32 128, %v28_v2  ;;  %v30_v4 = vadd.s32 256, %v28_v2  ;;  %v31_v5 = vadd.s32 384, %v28_v2  ;;  %v35_v6 = vmul.u32 512, %v26_v1 }
  0x13   :  { %p1212_p8 = por %p1211_p7, %p1210_p6 }
  0x14   :  { %v36_v7 = vadd.s32 %v35_v6, %v28_v2  ;;  %v37_v8 = vadd.s32 %v35_v6, %v29_v3  ;;  %v38_v9 = vadd.s32 %v35_v6, %v30_v4  ;;  %v39_v10 = vadd.s32 %v35_v6, %v31_v5 }
  0x15   :  { %p1213_p9 = pnand %p1212_p8, %p1206_p5 }
  0x16   :  { %v41_v11 = vmul.u32 2, %v36_v7  ;;  %v42_v12 = vmul.u32 2, %v37_v8 }
  0x17   :  { %v43_v13 = vmul.u32 2, %v38_v9  ;;  %v44_v14 = vmul.u32 2, %v39_v10 }
  0x18   :  { %v46_v16 = vxor.u32 %v45_v15, %v41_v11  ;;  %v47_v17 = vxor.u32 %v45_v15, %v42_v12  ;;  %v82_v18 = vadd.s32 1, %v41_v11  ;;  %v83_v19 = vadd.s32 1, %v42_v12 }
  0x19   :  { %v48_v20 = vxor.u32 %v45_v15, %v43_v13  ;;  %v49_v21 = vxor.u32 %v45_v15, %v44_v14  ;;  %v84_v22 = vadd.s32 1, %v43_v13  ;;  %v85_v23 = vadd.s32 1, %v44_v14 }
  0x1a   :  { %v50_v24 = vshrl.u32 %v46_v16, 16  ;;  %v51_v25 = vshrl.u32 %v47_v17, 16  ;;  %v86_v26 = vxor.u32 %v82_v18, %v45_v15  ;;  %v87_v27 = vxor.u32 %v83_v19, %v45_v15 }
  0x1b   :  { %v52_v28 = vshrl.u32 %v48_v20, 16  ;;  %v53_v29 = vshrl.u32 %v49_v21, 16  ;;  %v88_v30 = vxor.u32 %v84_v22, %v45_v15  ;;  %v89_v31 = vxor.u32 %v85_v23, %v45_v15 }
  0x1c   :  { %v54_v32 = vxor.u32 %v50_v24, %v46_v16  ;;  %v55_v33 = vxor.u32 %v51_v25, %v47_v17  ;;  %v90_v34 = vshrl.u32 %v86_v26, 16  ;;  %v91_v35 = vshrl.u32 %v87_v27, 16 }
  0x1d   :  { %v56_v36 = vxor.u32 %v52_v28, %v48_v20  ;;  %v92_v37 = vshrl.u32 %v88_v30, 16  ;;  %v93_v38 = vshrl.u32 %v89_v31, 16  ;;  %v57_v43 = vxor.u32 %v53_v29, %v49_v21 }
  0x1e   :  { %v58_v39 = vmul.u32 2146121005, %v54_v32  ;;  %v59_v40 = vmul.u32 2146121005, %v55_v33  ;;  %v94_v41 = vxor.u32 %v90_v34, %v86_v26  ;;  %v95_v42 = vxor.u32 %v91_v35, %v87_v27 }
  0x1f   :  { %v60_v44 = vmul.u32 2146121005, %v56_v36  ;;  %v96_v45 = vxor.u32 %v92_v37, %v88_v30  ;;  %v97_v46 = vxor.u32 %v93_v38, %v89_v31  ;;  %v61_v56 = vmul.u32 2146121005, %v57_v43 }
  0x20   :  { %v62_v47 = vshrl.u32 %v58_v39, 15  ;;  %v63_v48 = vshrl.u32 %v59_v40, 15  ;;  %v98_v49 = vmul.u32 2146121005, %v94_v41  ;;  %v99_v50 = vmul.u32 2146121005, %v95_v42 }
  0x21   :  { %v100_v51 = vmul.u32 2146121005, %v96_v45  ;;  %v64_v57 = vshrl.u32 %v60_v44, 15  ;;  %v101_v58 = vmul.u32 2146121005, %v97_v46  ;;  %v65_v5 = vshrl.u32 %v61_v56, 15 }
  0x22   :  { %v66_v52 = vxor.u32 %v62_v47, %v58_v39  ;;  %v67_v53 = vxor.u32 %v63_v48, %v59_v40  ;;  %v102_v54 = vshrl.u32 %v98_v49, 15  ;;  %v103_v55 = vshrl.u32 %v99_v50, 15 }
  0x23   :  { %v104_v59 = vshrl.u32 %v100_v51, 15  ;;  %v68_v6 = vxor.u32 %v64_v57, %v60_v44  ;;  %v105_v7 = vshrl.u32 %v101_v58, 15  ;;  %v69_v18 = vxor.u32 %v65_v5, %v61_v56 }
  0x24   :  { %v70_v60 = vmul.u32 2221549195, %v66_v52  ;;  %v71_v61 = vmul.u32 2221549195, %v67_v53  ;;  %v106_v62 = vxor.u32 %v102_v54, %v98_v49  ;;  %v107_v63 = vxor.u32 %v103_v55, %v99_v50 }
  0x25   :  { %v108_v0 = vxor.u32 %v104_v59, %v100_v51  ;;  %v72_v19 = vmul.u32 2221549195, %v68_v6  ;;  %v109_v20 = vxor.u32 %v105_v7, %v101_v58  ;;  %v73_v29 = vmul.u32 2221549195, %v69_v18 }
  0x26   :  { %v74_v1 = vshrl.u32 %v70_v60, 16  ;;  %v75_v2 = vshrl.u32 %v71_v61, 16  ;;  %v110_v3 = vmul.u32 2221549195, %v106_v62  ;;  %v111_v4 = vmul.u32 2221549195, %v107_v63 }
  0x27   :  { %v112_v8 = vmul.u32 2221549195, %v108_v0  ;;  %v76_v30 = vshrl.u32 %v72_v19, 16  ;;  %v113_v31 = vmul.u32 2221549195, %v109_v20  ;;  %v77_v38 = vshrl.u32 %v73_v29, 16 }
  0x28   :  { %v78_v9 = vxor.u32 %v74_v1, %v70_v60  ;;  %v79_v10 = vxor.u32 %v75_v2, %v71_v61  ;;  %v114_v11 = vshrl.u32 %v110_v3, 16  ;;  %v115_v12 = vshrl.u32 %v111_v4, 16 }
  0x29   :  { %v116_v13 = vshrl.u32 %v112_v8, 16  ;;  %v80_v39 = vxor.u32 %v76_v30, %v72_v19  ;;  %v117_v40 = vshrl.u32 %v113_v31, 16  ;;  %v81_v45 = vxor.u32 %v77_v38, %v73_v29 }
  0x2a   :  { %v118_v14 = vxor.u32 %v114_v11, %v110_v3  ;;  %v119_v15 = vxor.u32 %v115_v12, %v111_v4  ;;  %v122_v16 = vshrl.u32 %v78_v9, 9  ;;  %v123_v17 = vshrl.u32 %v79_v10, 9 }
  0x2b   :  { %v120_v21 = vxor.u32 %v116_v13, %v112_v8  ;;  %v121_v46 = vxor.u32 %v117_v40, %v113_v31  ;;  %v124_v47 = vshrl.u32 %v80_v39, 9  ;;  %v125_v54 = vshrl.u32 %v81_v45, 9 }
  0x2c   :  { %v126_v22 = vor.u32 1065353216, %v122_v16  ;;  %v138_v23 = vshrl.u32 %v118_v14, 9  ;;  %v139_v24 = vshrl.u32 %v119_v15, 9  ;;  %v127_v25 = vor.u32 1065353216, %v123_v17 }
  0x2d   :  { %v140_v32 = vshrl.u32 %v120_v21, 9  ;;  %v128_v55 = vor.u32 1065353216, %v124_v47  ;;  %v141_v56 = vshrl.u32 %v121_v46, 9  ;;  %v1274_v63 = vor.u32 1065353216, %v125_v54 }
  0x2e   :  { %v134_v26 = vsub.f32 2.0, %v126_v22  ;;  %v142_v27 = vor.u32 1065353216, %v138_v23  ;;  %v143_v28 = vor.u32 1065353216, %v139_v24  ;;  %v135_v35 = vsub.f32 2.0, %v127_v25 }
  0x2f   :  { %v144_v41 = vor.u32 1065353216, %v140_v32  ;;  %v136_v0 = vsub.f32 2.0, %v128_v55  ;;  %v145_v1 = vor.u32 1065353216, %v141_v56  ;;  %v137_v8 = vsub.f32 2.0, %v1274_v63 }
  0x30   :  { %v1091_v33 = vadd.f32 -1.0, %v142_v27  ;;  %v1092_v34 = vadd.f32 -1.0, %v143_v28  ;;  %1153 = vlog2.f32 %v134_v26  ;;  %v1232_v12 = vmov 683565275  }
  0x31   :  { %1155 = vlog2.f32 %v135_v35  ;;  %v1093_v49 = vadd.f32 -1.0, %v144_v41  ;;  %v1094_v9 = vadd.f32 -1.0, %v145_v1  ;;  %v1233_v17 = vmov 2475754826  }
  0x32   :  { %v1263_v36 = vmul.f32 6.2831855, %v1091_v33  ;;  %v1265_v37 = vmul.f32 6.2831855, %v1092_v34  ;;  %1157 = vlog2.f32 %v136_v0  ;;  %v1234_v19 = vmov 2131351028  }
  0x33   :  { %v1270_v57 = vmul.f32 6.2831855, %v1093_v49  ;;  %v1235_v27 = vmov 2102212464   ;;  %v1236_v30 = vmov 920167782  }
  0x34   :  { %v201_v42 = vand.u32 2139095040, %v1263_v36  ;;  %v304_v43 = vand.u32 2139095040, %v1265_v37  ;;  %v198_v51 = vand.u32 2147483647, %v1263_v36  ;;  %v301_v2 = vand.u32 2147483647, %v1265_v37 }
  0x35   :  { %v407_v3 = vand.u32 2139095040, %v1270_v57  ;;  %v1237_v34 = vmov 1326507024   ;;  %v404_v1 = vand.u32 2147483647, %v1270_v57  ;;  %vm200_vm15 = vcmp.lt.s32.totalorder %v1263_v36, 0 }
  0x36   :  { %v202_v44 = vshrl.u32 %v201_v42, 23  ;;  %v305_v48 = vshrl.u32 %v304_v43, 23  ;;  %v205_v59 = vand.u32 8388607, %v198_v51  ;;  %v1284_v14 = vand.u32 8388607, %v301_v2 }
  0x37   :  { %v408_v15 = vshrl.u32 %v407_v3, 23 }
  0x38   :  { %v1095_v50 = vadd.s32 4294967169, %v202_v44  ;;  %v1099_v52 = vadd.s32 4294967169, %v305_v48  ;;  %v206_v4 = vor.u32 8388608, %v205_v59 }
  0x39   :  { %v1103_v55 = vadd.s32 4294967169, %v408_v15 }
  0x3a   :  { %v208_v53 = vadd.s32 1, %v1095_v50  ;;  %v311_v58 = vadd.s32 1, %v1099_v52  ;;  %v1288_v21 = vshll.u32 %v206_v4, 8  ;;  %v1304_v52 = vmul.f32 6.2831855, %v1094_v9 }
  0x3b   :  { %v309_v4 = vor.u32 8388608, %v1284_v14 }
  0x3c   :  { %vm209_vm0 = vcmp.gt.s32.totalorder %v208_v53, 0  ;;  %vm312_vm1 = vcmp.gt.s32.totalorder %v311_v58, 0 }
  0x3d   :  { %v210_v60 = vsel %vm209_vm0, %v208_v53, 0  ;;  %v1154_v62 = vpop.eup %1153  ;;  %v1279_v10 = vsel %vm312_vm1, %v311_v58, 0 }
  0x3e   :  { %v212_v61 = vand.u32 31, %v210_v60  ;;  %v1156_v5 = vpop.eup %1155  ;;  %v159_v6 = vmul.f32 0.6931472, %v1154_v62  ;;  %v211_v11 = vshrl.u32 %v210_v60, 5  ;;  %v1295_v25 = vand.u32 31, %v1279_v10 }
  0x3f   :  { %v161_v16 = vmul.f32 0.6931472, %v1156_v5  ;;  %v1158_v3 = vpop.eup %1157 }
  0x40   :  { %v213_v7 = vsub.s32 32, %v212_v61  ;;  %v215_v13 = vshll.u32 %v1232_v12, %v212_v61  ;;  %v218_v18 = vshll.u32 %v1233_v17, %v212_v61  ;;  %v221_v20 = vshll.u32 %v1234_v19, %v212_v61 }
  0x41   :  { %v1290_v22 = vmul.f32 -2.0, %v159_v6  ;;  %v224_v29 = vshll.u32 %v1235_v27, %v212_v61  ;;  %v227_v33 = vshll.u32 %v1236_v30, %v212_v61  ;;  %vm230_vm2 = vcmp.lt.s32.totalorder %v211_v11, 1 }
  0x42   :  { %v214_v23 = vshrl.u32 %v1232_v12, %v213_v7  ;;  %v216_v24 = vshrl.u32 %v1233_v17, %v213_v7  ;;  %v219_v26 = vshrl.u32 %v1234_v19, %v213_v7  ;;  %v222_v28 = vshrl.u32 %v1235_v27, %v213_v7 }
  0x43   :  { %v225_v31 = vshrl.u32 %v1236_v30, %v213_v7  ;;  %v228_v35 = vshrl.u32 %v1237_v34, %v213_v7  ;;  %vm231_vm3 = vcmp.lt.s32.totalorder %v211_v11, 2  ;;  %vm232_vm4 = vcmp.lt.s32.totalorder %v211_v11, 3 }
  0x44   :  { %v217_v32 = vor.u32 %v216_v24, %v215_v13  ;;  %v220_v38 = vor.u32 %v219_v26, %v218_v18  ;;  %v223_v39 = vor.u32 %v222_v28, %v221_v20  ;;  %vm233_vm5 = vcmp.lt.s32.totalorder %v211_v11, 4 }
  0x45   :  { %v226_v40 = vor.u32 %v225_v31, %v224_v29  ;;  %v229_v41 = vor.u32 %v228_v35, %v227_v33  ;;  %v316_v50 = vsub.s32 32, %v1295_v25  ;;  %v1307_v56 = vmul.f32 -2.0, %v161_v16 }
  0x46   :  { %v234_v42 = vsel %vm230_vm2, %v214_v23, %v217_v32  ;;  %v235_v43 = vsel %vm233_vm5, %v223_v39, 2102212464  ;;  %v238_v44 = vsel %vm230_vm2, %v217_v32, %v220_v38  ;;  %v242_v46 = vsel %vm230_vm2, %v220_v38, %v223_v39 }
  0x47   :  { %v239_v45 = vsel %vm233_vm5, %v226_v40, 920167782  ;;  %v236_v47 = vsel %vm232_vm4, %v220_v38, %v235_v43  ;;  %v243_v49 = vsel %vm233_vm5, %v229_v41, 1326507024  ;;  %1159 = vrsqrt.f32 %v1290_v22 }
  0x48   :  { %v240_v48 = vsel %vm232_vm4, %v223_v39, %v239_v45  ;;  %v244_v54 = vsel %vm232_vm4, %v226_v40, %v243_v49  ;;  %v237_v61 = vsel %vm231_vm3, %v234_v42, %v236_v47  ;;  %v318_v5 = vshll.u32 %v1232_v12, %v1295_v25 }
  0x49   :  { %v241_v53 = vsel %vm231_vm3, %v238_v44, %v240_v48  ;;  %v245_v58 = vsel %vm231_vm3, %v242_v46, %v244_v54  ;;  %v319_v6 = vshrl.u32 %v1233_v17, %v316_v50  ;;  %v321_v7 = vshll.u32 %v1233_v17, %v1295_v25 }
  0x4a   :  { %v1311_v59 = vmul.u32.u64.low %v1288_v21, %v241_v53  ;;  %v1312_v60 = vmul.u32.u64.high %v1288_v21, %v241_v53, %v1311_v59  ;;  %v1317_v62 = vmul.u32.u64.low %v1288_v21, %v245_v58  ;;  %v1318_v0 = vmul.u32.u64.high %v1288_v21, %v245_v58, %v1317_v62 }
  0x4b   :  { %v322_v9 = vshrl.u32 %v1234_v19, %v316_v50  ;;  %v324_v11 = vshll.u32 %v1234_v19, %v1295_v25  ;;  %v325_v13 = vshrl.u32 %v1235_v27, %v316_v50  ;;  %1161 = vrsqrt.f32 %v1307_v56 }
  0x4c   :  { %v253_v15 = vmul.u32 %v1288_v21, %v237_v61  ;;  %v256_v14 = vadd.s32 1, %v1312_v60  ;;  %v414_v16 = vadd.s32 1, %v1103_v55  ;;  %v314_v18 = vshrl.u32 %v1279_v10, 5 }
  0x4d   :  { %v327_v20 = vshll.u32 %v1235_v27, %v1295_v25  ;;  %v1340_v23 = vand.u32 8388607, %v404_v1  ;;  %v507_v24 = vand.u32 2147483647, %v1304_v52  ;;  %vm255_vm6 = vc.u32 %v1318_v0, %v1311_v59 }
  0x4e   :  { %v317_v26 = vshrl.u32 %v1232_v12, %v316_v50  ;;  %v320_v21 = vor.u32 %v319_v6, %v318_v5  ;;  %v1346_v28 = vshll.u32 %v309_v4, 8  ;;  %v257_v29 = vsel %vm255_vm6, %v256_v14, %v1312_v60 }
  0x4f   :  { %v323_v10 = vor.u32 %v322_v9, %v321_v7  ;;  %v326_v31 = vor.u32 %v325_v13, %v324_v11  ;;  %v328_v32 = vshrl.u32 %v1236_v30, %v316_v50  ;;  %v258_v33 = vadd.s32 %v257_v29, %v253_v15 }
  0x50   :  { %v330_v35 = vshll.u32 %v1236_v30, %v1295_v25  ;;  %v331_v38 = vshrl.u32 %v1237_v34, %v316_v50  ;;  %vm415_vm7 = vcmp.gt.s32.totalorder %v414_v16, 0  ;;  %vm333_vm8 = vcmp.lt.s32.totalorder %v314_v18, 1 }
  0x51   :  { %v329_v39 = vor.u32 %v328_v32, %v327_v20  ;;  %vm334_vm9 = vcmp.lt.s32.totalorder %v314_v18, 2  ;;  %vm335_vm10 = vcmp.lt.s32.totalorder %v314_v18, 3  ;;  %v259_v40 = vadd.s32 536870912, %v258_v33 }
  0x52   :  { %v332_v41 = vor.u32 %v331_v38, %v330_v35  ;;  %vm336_vm11 = vcmp.lt.s32.totalorder %v314_v18, 4  ;;  %v337_v42 = vsel %vm333_vm8, %v317_v26, %v320_v21  ;;  %v341_v44 = vsel %vm333_vm8, %v320_v21, %v323_v10 }
  0x53   :  { %v338_v43 = vsel %vm336_vm11, %v326_v31, 2102212464  ;;  %v342_v45 = vsel %vm336_vm11, %v329_v39, 920167782  ;;  %v345_v46 = vsel %vm333_vm8, %v323_v10, %v326_v31  ;;  %v1353_v47 = vshrl.u32 %v259_v40, 30 }
  0x54   :  { %v339_v48 = vsel %vm335_vm10, %v323_v10, %v338_v43  ;;  %v343_v49 = vsel %vm335_vm10, %v326_v31, %v342_v45  ;;  %v346_v25 = vsel %vm336_vm11, %v332_v41, 1326507024  ;;  %v163_v53 = vmul.f32 0.6931472, %v1158_v3  ;;  %v1160_v62 = vpop.eup %1159 }
  0x55   :  { %v344_v50 = vsel %vm334_vm9, %v341_v44, %v343_v49  ;;  %v347_v54 = vsel %vm335_vm10, %v329_v39, %v346_v25  ;;  %v416_v55 = vsel %vm415_vm7, %v414_v16, 0  ;;  %v261_v58 = vshll.u32 %v1353_v47, 30 }
  0x56   :  { %v340_v60 = vsel %vm334_vm9, %v337_v42, %v339_v48  ;;  %v348_v61 = vsel %vm334_vm9, %v345_v46, %v347_v54  ;;  %v1365_v6 = vmul.u32.u64.low %v1346_v28, %v344_v50  ;;  %v1366_v7 = vmul.u32.u64.high %v1346_v28, %v344_v50, %v1365_v6 }
  0x57   :  { %v1361_v4 = vmul.u32.u64.low %v1346_v28, %v348_v61  ;;  %v1362_v5 = vmul.u32.u64.high %v1346_v28, %v348_v61, %v1361_v4  ;;  %1163 = vlog2.f32 %v137_v8  ;;  %v1371_v3 = vsub.s32 %v258_v33, %v261_v58 }
  0x58   :  { %v418_v9 = vand.u32 31, %v416_v55  ;;  %v1162_v11 = vpop.eup %1161  ;;  %v1373_v13 = vmul.f32 -2.0, %v163_v53  ;;  %v412_v15 = vor.u32 8388608, %v1340_v23  ;;  %v510_v14 = vand.u32 2139095040, %v1304_v52 }
  0x59   :  { %v1379_v16 = vand.u32 8388607, %v507_v24  ;;  %vm172_vm12 = vcmp.eq.f32.partialorder %v1290_v22, inf  ;;  %v264_v18 = vsub.s32 0, %v1371_v3  ;;  %v356_v63 = vmul.u32 %v1346_v28, %v340_v60 }
  0x5a   :  { %v419_v8 = vsub.s32 32, %v418_v9  ;;  %v171_v20 = vmul.f32 %v1160_v62, %v1290_v22  ;;  %v175_v26 = vand.u32 2147483648, %v1290_v22  ;;  %vm358_vm13 = vc.u32 %v1362_v5, %v1365_v6 }
  0x5b   :  { %v359_v21 = vadd.s32 1, %v1366_v7  ;;  %v1390_v29 = vmul.f32 %v1162_v11, %v1307_v56  ;;  %v1096_v10 = vmin.u32 %v264_v18, %v1371_v3  ;;  %v1393_v31 = vshrl.u32 %v416_v55, 5 }
  0x5c   :  { %v421_v32 = vshll.u32 %v1232_v12, %v418_v9  ;;  %v422_v33 = vshrl.u32 %v1233_v17, %v419_v8  ;;  %v424_v35 = vshll.u32 %v1233_v17, %v418_v9  ;;  %v425_v38 = vshrl.u32 %v1234_v19, %v419_v8 }
  0x5d   :  { %v360_v28 = vsel %vm358_vm13, %v359_v21, %v1366_v7  ;;  %v266_v39 = vclz %v1096_v10  ;;  %v427_v41 = vshll.u32 %v1234_v19, %v418_v9  ;;  %v428_v42 = vshrl.u32 %v1235_v27, %v419_v8 }
  0x5e   :  { %v361_v40 = vadd.s32 %v360_v28, %v356_v63  ;;  %v173_v43 = vsel %vm172_vm12, %v1290_v22, %v171_v20  ;;  %v254_v44 = vadd.s32 %v1311_v59, %v1318_v0  ;;  %v430_v45 = vshll.u32 %v1235_v27, %v418_v9 }
  0x5f   :  { %v431_v46 = vshrl.u32 %v1236_v30, %v419_v8  ;;  %vm174_vm14 = vcmp.eq.f32.partialorder %v1290_v22, 0.0  ;;  %v1097_v48 = vadd.s32 4294967294, %v266_v39  ;;  %v284_v49 = vsub.s32 4, %v1353_v47 }
  0x60   :  { %v362_v25 = vadd.s32 536870912, %v361_v40  ;;  %v433_v53 = vshll.u32 %v1236_v30, %v418_v9  ;;  %v423_v50 = vor.u32 %v422_v33, %v421_v32  ;;  %v426_v54 = vor.u32 %v425_v38, %v424_v35 }
  0x61   :  { %v432_v55 = vor.u32 %v431_v46, %v430_v45  ;;  %v434_v58 = vshrl.u32 %v1237_v34, %v419_v8  ;;  %vm1098_vm0 = vcmp.lt.s32.totalorder %v1097_v48, 0  ;;  %v429_v0 = vor.u32 %v428_v42, %v427_v41 }
  0x62   :  { %v1414_v59 = vshrl.u32 %v362_v25, 30  ;;  %vm439_vm1 = vcmp.lt.s32.totalorder %v1393_v31, 4  ;;  %vm179_vm2 = vcmp.eq.f32.partialorder %v1307_v56, inf  ;;  %v269_v60 = vsel %vm1098_vm0, 0, %v1097_v48 }
  0x63   :  { %v435_v61 = vor.u32 %v434_v58, %v433_v53  ;;  %vm436_vm3 = vcmp.lt.s32.totalorder %v1393_v31, 1  ;;  %vm438_vm4 = vcmp.lt.s32.totalorder %v1393_v31, 3  ;;  %v270_v62 = vsub.s32 32, %v269_v60 }
  0x64   :  { %v271_v4 = vshll.u32 %v1371_v3, %v269_v60  ;;  %v274_v7 = vsub.s32 4294967266, %v269_v60  ;;  %v364_v9 = vshll.u32 %v1414_v59, 30  ;;  %v1422_v11 = vpop.eup %1163  ;;  %vm1426_vm5 = vcmp.le.f32.partialorder %v198_v51, 0.7853982 }
  0x65   :  { %v420_v63 = vshrl.u32 %v1232_v12, %v419_v8  ;;  %vm437_vm6 = vcmp.lt.s32.totalorder %v1393_v31, 2  ;;  %v441_v20 = vsel %vm439_vm1, %v429_v0, 2102212464  ;;  %v445_v3 = vsel %vm439_vm1, %v432_v55, 920167782 }
  0x66   :  { %v272_v21 = vshrl.u32 %v254_v44, %v270_v62  ;;  %v275_v10 = vadd.s32 127, %v274_v7  ;;  %v1436_v32 = vsub.s32 %v361_v40, %v364_v9  ;;  %v444_v51 = vsel %vm436_vm3, %v423_v50, %v426_v54 }
  0x67   :  { %v446_v28 = vsel %vm438_vm4, %v429_v0, %v445_v3  ;;  %v448_v8 = vsel %vm436_vm3, %v426_v54, %v429_v0  ;;  %v449_v33 = vsel %vm439_vm1, %v435_v61, 1326507024  ;;  %v511_v35 = vshrl.u32 %v510_v14, 23 }
  0x68   :  { %v273_v38 = vor.u32 %v272_v21, %v271_v4  ;;  %v276_v39 = vshll.u32 %v275_v10, 23  ;;  %v367_v41 = vsub.s32 0, %v1436_v32  ;;  %v452_v40 = vshll.u32 %v412_v15, 8 }
  0x69   :  { %v440_v42 = vsel %vm436_vm3, %v420_v63, %v423_v50  ;;  %v442_v44 = vsel %vm438_vm4, %v426_v54, %v441_v20  ;;  %v447_v45 = vsel %vm437_vm6, %v444_v51, %v446_v28  ;;  %v450_v46 = vsel %vm438_vm4, %v432_v55, %v449_v33 }
  0x6a   :  { %v277_v14 = vor.u32 4788187, %v276_v39  ;;  %v280_v48 = vcvt.s32.f32 %v273_v38  ;;  %vm303_vm7 = vcmp.lt.s32.totalorder %v1265_v37, 0  ;;  %v1100_v25 = vmin.u32 %v367_v41, %v1436_v32 }
  0x6b   :  { %v451_v23 = vsel %vm437_vm6, %v448_v8, %v450_v46  ;;  %v1465_v15 = vsel %vm174_vm14, %v175_v26, %v173_v43  ;;  %v182_v53 = vand.u32 2147483648, %v1307_v56  ;;  %v285_v50 = vsel %vm200_vm15, %v284_v49, %v1353_v47 }
  0x6c   :  { %v1107_v54 = vadd.s32 4294967169, %v511_v35  ;;  %v278_v55 = vand.u32 2147483647, %v277_v14  ;;  %v369_v58 = vclz %v1100_v25  ;;  %v443_v61 = vsel %vm437_vm6, %v440_v42, %v442_v44 }
  0x6d   :  { %v1471_v0 = vmul.u32.u64.low %v452_v40, %v451_v23  ;;  %v1472_v60 = vmul.u32.u64.high %v452_v40, %v451_v23, %v1471_v0  ;;  %v1476_v62 = vmul.u32.u64.low %v452_v40, %v447_v45  ;;  %v1477_v4 = vmul.u32.u64.high %v452_v40, %v447_v45, %v1476_v62 }
  0x6e   :  { %v517_v22 = vadd.s32 1, %v1107_v54  ;;  %v1484_v26 = vsel %vm179_vm2, %v1307_v56, %v1390_v29  ;;  %v281_v47 = vmul.f32 %v280_v48, %v278_v55  ;;  %v1488_v43 = vsel %vm1426_vm5, 0, %v285_v50 }
  0x6f   :  { %v1101_v49 = vadd.s32 4294967294, %v369_v58  ;;  %v357_v31 = vadd.s32 %v1365_v6, %v1362_v5  ;;  %v387_v7 = vsub.s32 4, %v1414_v59  ;;  %v515_v9 = vor.u32 8388608, %v1379_v16 }
  0x70   :  { %vm518_vm8 = vcmp.gt.s32.totalorder %v517_v22, 0  ;;  %v282_v63 = vxor.u32 2147483648, %v281_v47  ;;  %vm1496_vm9 = vcmp.le.f32.partialorder %v301_v2, 0.7853982  ;;  %v459_v20 = vmul.u32 %v452_v40, %v443_v61 }
  0x71   :  { %vm1102_vm10 = vcmp.lt.s32.totalorder %v1101_v49, 0  ;;  %vm461_vm11 = vc.u32 %v1472_v60, %v1476_v62  ;;  %v1503_v3 = vand.u32 3, %v1488_v43  ;;  %v462_v6 = vadd.s32 1, %v1477_v4 }
  0x72   :  { %v372_v5 = vsel %vm1102_vm10, 0, %v1101_v49  ;;  %v519_v16 = vsel %vm518_vm8, %v517_v22, 0  ;;  %v283_v21 = vsel %vm200_vm15, %v282_v63, %v281_v47  ;;  %v388_v8 = vsel %vm303_vm7, %v387_v7, %v1414_v59 }
  0x73   :  { %v373_v10 = vsub.s32 32, %v372_v5  ;;  %v374_v2 = vshll.u32 %v1436_v32, %v372_v5  ;;  %v377_v51 = vsub.s32 4294967266, %v372_v5  ;;  %v286_v28 = vsel %vm1426_vm5, %v1263_v36, %v283_v21 }
  0x74   :  { %v463_v33 = vsel %vm461_vm11, %v462_v6, %v1477_v4  ;;  %v521_v35 = vand.u32 31, %v519_v16  ;;  %1165 = vcosq.f32 %v286_v28  ;;  %v1516_v40 = vshrl.u32 %v519_v16, 5 }
  0x75   :  { %v375_v38 = vshrl.u32 %v357_v31, %v373_v10  ;;  %v378_v39 = vadd.s32 127, %v377_v51  ;;  %v464_v41 = vadd.s32 %v463_v33, %v459_v20  ;;  %1167 = vsinq.f32 %v286_v28 }
  0x76   :  { %v522_v32 = vsub.s32 32, %v521_v35  ;;  %v524_v42 = vshll.u32 %v1232_v12, %v521_v35  ;;  %v527_v46 = vshll.u32 %v1233_v17, %v521_v35  ;;  %v530_v48 = vshll.u32 %v1234_v19, %v521_v35 }
  0x77   :  { %v376_v44 = vor.u32 %v375_v38, %v374_v2  ;;  %v379_v18 = vshll.u32 %v378_v39, 23  ;;  %v465_v45 = vadd.s32 536870912, %v464_v41  ;;  %v533_v55 = vshll.u32 %v1235_v27, %v521_v35 }
  0x78   :  { %v525_v59 = vshrl.u32 %v1233_v17, %v522_v32  ;;  %v528_v14 = vshrl.u32 %v1234_v19, %v522_v32  ;;  %v531_v25 = vshrl.u32 %v1235_v27, %v522_v32  ;;  %vm296_vm12 = vcmp.eq.s32.totalorder %v1503_v3, 2 }
  0x79   :  { %v380_v23 = vor.u32 4788187, %v379_v18  ;;  %v383_v50 = vcvt.s32.f32 %v376_v44  ;;  %v1524_v54 = vshrl.u32 %v465_v45, 30  ;;  %v1530_v58 = vsel %vm1496_vm9, 0, %v388_v8 }
  0x7a   :  { %v534_v17 = vshrl.u32 %v1236_v30, %v522_v32  ;;  %v1533_v0 = vshll.u32 %v515_v9, 8  ;;  %vm293_vm13 = vcmp.eq.s32.totalorder %v1503_v3, 0  ;;  %v523_v4 = vshrl.u32 %v1232_v12, %v522_v32 }
  0x7b   :  { %v381_v19 = vand.u32 2147483647, %v380_v23  ;;  %v467_v61 = vshll.u32 %v1524_v54, 30  ;;  %v526_v22 = vor.u32 %v525_v59, %v524_v42  ;;  %vm292_vm14 = vcmp.lt.s32.totalorder %v1503_v3, 2 }
  0x7c   :  { %v529_v27 = vor.u32 %v528_v14, %v527_v46  ;;  %v535_v47 = vor.u32 %v534_v17, %v533_v55  ;;  %v536_v49 = vshll.u32 %v1236_v30, %v521_v35  ;;  %v537_v31 = vshrl.u32 %v1237_v34, %v522_v32 }
  0x7d   :  { %v384_v7 = vmul.f32 %v383_v50, %v381_v19  ;;  %v1541_v63 = vsub.s32 %v464_v41, %v467_v61  ;;  %v532_v9 = vor.u32 %v531_v25, %v530_v48  ;;  %vm539_vm15 = vcmp.lt.s32.totalorder %v1516_v40, 1  ;;  %v1034_v61 = vld [vmem:[#allocation4] sm:$0xff] }
  0x7e   :  { %vm290_vm0 = vweird.f32 %v1263_v36  ;;  %vm540_vm1 = vcmp.lt.s32.totalorder %v1516_v40, 2  ;;  %vm541_vm2 = vcmp.lt.s32.totalorder %v1516_v40, 3  ;;  %vm542_vm3 = vcmp.lt.s32.totalorder %v1516_v40, 4 }
  0x7f   :  { %v707_v12 = vadd.s32 3, %v1488_v43  ;;  %v385_v20 = vxor.u32 2147483648, %v384_v7  ;;  %v470_v30 = vsub.s32 0, %v1541_v63  ;;  %v543_v34 = vsel %vm539_vm15, %v523_v4, %v526_v22 }
  0x80   :  { %v544_v5 = vsel %vm542_vm3, %v532_v9, 2102212464  ;;  %v538_v6 = vor.u32 %v537_v31, %v536_v49  ;;  %v547_v21 = vsel %vm539_vm15, %v526_v22, %v529_v27  ;;  %v548_v10 = vsel %vm542_vm3, %v535_v47, 920167782 }
  0x81   :  { %v545_v16 = vsel %vm541_vm2, %v529_v27, %v544_v5  ;;  %v386_v43 = vsel %vm303_vm7, %v385_v20, %v384_v7  ;;  %v460_v2 = vadd.s32 %v1476_v62, %v1472_v60  ;;  %v1104_v51 = vmin.u32 %v470_v30, %v1541_v63  ;;  %v1166_v8 = vpop.eup %1165 }
  0x82   :  { %v811_v28 = vadd.s32 3, %v1530_v58  ;;  %v389_v33 = vsel %vm1496_vm9, %v1265_v37, %v386_v43  ;;  %v546_v35 = vsel %vm540_vm1, %v543_v34, %v545_v16  ;;  %v549_v38 = vsel %vm541_vm2, %v532_v9, %v548_v10  ;;  %v1168_v41 = vpop.eup %1167 }
  0x83   :  { %v551_v39 = vsel %vm539_vm15, %v529_v27, %v532_v9  ;;  %vm181_vm4 = vcmp.eq.f32.partialorder %v1307_v56, 0.0  ;;  %v297_v60 = vxor.u32 2147483648, %v1166_v8  ;;  %1169 = vcosq.f32 %v389_v33 }
  0x84   :  { %v472_v62 = vclz %v1104_v51  ;;  %v550_v32 = vsel %vm540_vm1, %v547_v21, %v549_v38  ;;  %v294_v29 = vxor.u32 2147483648, %v1168_v41  ;;  %1171 = vsinq.f32 %v389_v33  ;;  %v1038_v51 = vld [vmem:[#allocation4 + $0x20] sm:$0xff] }
  0x85   :  { %v552_v42 = vsel %vm542_vm3, %v538_v6, 1326507024  ;;  %v708_v44 = vand.u32 3, %v707_v12  ;;  %v298_v18 = vsel %vm296_vm12, %v297_v60, %v1168_v41  ;;  %v562_v59 = vmul.u32 %v1533_v0, %v546_v35 }
  0x86   :  { %v1105_v45 = vadd.s32 4294967294, %v472_v62  ;;  %v553_v46 = vsel %vm541_vm2, %v535_v47, %v552_v42  ;;  %v295_v14 = vsel %vm293_vm13, %v1166_v8, %v294_v29  ;;  %v394_v3 = vand.u32 3, %v1530_v58 }
  0x87   :  { %v554_v48 = vsel %vm540_vm1, %v551_v39, %v553_v46  ;;  %v1590_v25 = vmul.u32.u64.low %v1533_v0, %v550_v32  ;;  %v1591_v23 = vmul.u32.u64.high %v1533_v0, %v550_v32, %v1590_v25  ;;  %v299_v50 = vsel %vm292_vm14, %v295_v14, %v298_v18 }
  0x88   :  { %vm1106_vm5 = vcmp.lt.s32.totalorder %v1105_v45, 0  ;;  %v1597_v55 = vmul.u32.u64.low %v1533_v0, %v554_v48  ;;  %v1598_v17 = vmul.u32.u64.high %v1533_v0, %v554_v48, %v1597_v55  ;;  %vm709_vm6 = vcmp.lt.s32.totalorder %v708_v44, 2 }
  0x89   :  { %v475_v19 = vsel %vm1106_vm5, 0, %v1105_v45  ;;  %vm710_vm7 = vcmp.eq.s32.totalorder %v708_v44, 0  ;;  %vm713_vm8 = vcmp.eq.s32.totalorder %v708_v44, 2  ;;  %v300_v40 = vsel %vm290_vm0, nan, %v299_v50 }
  0x8a   :  { %v476_v4 = vsub.s32 32, %v475_v19  ;;  %v477_v22 = vshll.u32 %v1541_v63, %v475_v19  ;;  %v480_v27 = vsub.s32 4294967266, %v475_v19  ;;  %v565_v47 = vadd.s32 1, %v1591_v23 }
  0x8b   :  { %v712_v49 = vsel %vm710_vm7, %v1166_v8, %v294_v29  ;;  %v715_v31 = vsel %vm713_vm8, %v297_v60, %v1168_v41  ;;  %vm564_vm9 = vc.u32 %v1598_v17, %v1590_v25  ;;  %v1042_v9 = vmul.f32 0.1, %v1034_v61  ;;  %v1035_v60 = vld [vmem:[#allocation4 + $0x8] sm:$0xff] }
  0x8c   :  { %v478_v0 = vshrl.u32 %v460_v2, %v476_v4  ;;  %v481_v7 = vadd.s32 127, %v480_v27  ;;  %v566_v12 = vsel %vm564_vm9, %v565_v47, %v1591_v23  ;;  %v610_v20 = vmul.f32 %v300_v40, %v1465_v15 }
  0x8d   :  { %v716_v30 = vsel %vm709_vm6, %v712_v49, %v715_v31  ;;  %v812_v63 = vand.u32 3, %v811_v28  ;;  %vm393_vm10 = vweird.f32 %v1265_v37  ;;  %v567_v5 = vadd.s32 %v566_v12, %v562_v59  ;;  %v1039_v59 = vld [vmem:[#allocation4 + $0x28] sm:$0xff] }
  0x8e   :  { %v479_v58 = vor.u32 %v478_v0, %v477_v22  ;;  %v482_v34 = vshll.u32 %v481_v7, 23  ;;  %v183_v6 = vsel %vm181_vm4, %v182_v53, %v1484_v26  ;;  %1173 = vrsqrt.f32 %v1373_v13 }
  0x8f   :  { %vm395_vm11 = vcmp.lt.s32.totalorder %v394_v3, 2  ;;  %vm406_vm12 = vcmp.lt.s32.totalorder %v1270_v57, 0  ;;  %v568_v10 = vadd.s32 536870912, %v567_v5  ;;  %v717_v43 = vsel %vm290_vm0, nan, %v716_v30 }
  0x90   :  { %v483_v16 = vor.u32 4788187, %v482_v34  ;;  %v486_v21 = vcvt.s32.f32 %v479_v58  ;;  %v1170_v2 = vpop.eup %1169  ;;  %vm396_vm13 = vcmp.eq.s32.totalorder %v394_v3, 0  ;;  %vm399_vm14 = vcmp.eq.s32.totalorder %v394_v3, 2 }
  0x91   :  { %vm814_vm15 = vcmp.eq.s32.totalorder %v812_v63, 0  ;;  %v1046_v28 = vmul.f32 %v1042_v9, %v610_v20  ;;  %v1172_v8 = vpop.eup %1171  ;;  %v400_v56 = vxor.u32 2147483648, %v1170_v2  ;;  %v1620_v26 = vshrl.u32 %v568_v10, 30 }
  0x92   :  { %v484_v53 = vand.u32 2147483647, %v483_v16  ;;  %vm817_vm1 = vcmp.eq.s32.totalorder %v812_v63, 2  ;;  %v397_v33 = vxor.u32 2147483648, %v1172_v8  ;;  %v490_v35 = vsub.s32 4, %v1524_v54 }
  0x93   :  { %vm813_vm2 = vcmp.lt.s32.totalorder %v812_v63, 2  ;;  %v1030_v38 = vmul.f32 %v717_v43, %v1465_v15  ;;  %v401_v36 = vsel %vm399_vm14, %v400_v56, %v1172_v8  ;;  %v570_v41 = vshll.u32 %v1620_v26, 30 }
  0x94   :  { %v487_v39 = vmul.f32 %v486_v21, %v484_v53  ;;  %v1058_v62 = vmul.f32 0.1, %v1038_v51  ;;  %v398_v32 = vsel %vm396_vm13, %v1170_v2, %v397_v33  ;;  %v816_v29 = vsel %vm814_vm15, %v1170_v2, %v397_v33 }
  0x95   :  { %v819_v42 = vsel %vm817_vm1, %v400_v56, %v1172_v8  ;;  %v1050_v44 = vadd.f32 %v1046_v28, %v1034_v61  ;;  %v402_v18 = vsel %vm395_vm11, %v398_v32, %v401_v36  ;;  %vm1630_vm0 = vcmp.le.f32.partialorder %v404_v1, 0.7853982 }
  0x96   :  { %v488_v15 = vxor.u32 2147483648, %v487_v39  ;;  %v571_v46 = vsub.s32 %v567_v5, %v570_v41  ;;  %v403_v14 = vsel %vm393_vm10, nan, %v402_v18  ;;  %v820_v48 = vsel %vm813_vm2, %v816_v29, %v819_v42 }
  0x97   :  { %v1043_v23 = vmul.f32 0.1, %v1035_v60  ;;  %1054 = vst [vmem:[#allocation7] sm:$0xff] %v1050_v44  ;;  %v491_v1 = vsel %vm406_vm12, %v490_v35, %v1524_v54  ;;  %v611_v19 = vmul.f32 %v403_v14, %v183_v6  ;;  %v821_v40 = vsel %vm393_vm10, nan, %v820_v48 }
  0x98   :  { %v489_v50 = vsel %vm406_vm12, %v488_v15, %v487_v39  ;;  %v573_v55 = vsub.s32 0, %v571_v46  ;;  %v1059_v4 = vmul.f32 0.1, %v1039_v59  ;;  %v1062_v22 = vmul.f32 %v1058_v62, %v1030_v38  ;;  %v1036_v38 = vld [vmem:[#allocation4 + $0x10] sm:$0xff] }
  0x99   :  { %v492_v61 = vsel %vm1630_vm0, %v1270_v57, %v489_v50  ;;  %v1031_v3 = vmul.f32 %v821_v40, %v183_v6  ;;  %v493_v49 = vsel %vm1630_vm0, 0, %v491_v1  ;;  %v1047_v31 = vmul.f32 %v1043_v23, %v611_v19  ;;  %v1040_v39 = vld [vmem:[#allocation4 + $0x30] sm:$0xff] }
  0x9a   :  { %1175 = vcosq.f32 %v492_v61  ;;  %v1108_v27 = vmin.u32 %v573_v55, %v571_v46  ;;  %v1066_v0 = vadd.f32 %v1062_v22, %v1038_v51  ;;  %v915_v20 = vadd.s32 3, %v493_v49 }
  0x9b   :  { %1177 = vsinq.f32 %v492_v61  ;;  %v1174_v47 = vpop.eup %1173  ;;  %v1063_v7 = vmul.f32 %v1059_v4, %v1031_v3  ;;  %v1051_v12 = vadd.f32 %v1047_v31, %v1035_v60  ;;  %v563_v30 = vadd.s32 %v1590_v25, %v1598_v17 }
  0x9c   :  { %v575_v54 = vclz %v1108_v27  ;;  %1070 = vst [vmem:[#allocation7 + $0x20] sm:$0xff] %v1066_v0  ;;  %v165_v63 = vmul.f32 0.6931472, %v1422_v11  ;;  %v185_v16 = vmul.f32 %v1174_v47, %v1373_v13  ;;  %v497_v21 = vand.u32 3, %v493_v49 }
  0x9d   :  { %v1067_v37 = vadd.f32 %v1063_v7, %v1039_v59  ;;  %1055 = vst [vmem:[#allocation7 + $0x8] sm:$0xff] %v1051_v12  ;;  %v916_v10 = vand.u32 3, %v915_v20  ;;  %vm186_vm4 = vcmp.eq.f32.partialorder %v1373_v13, inf  ;;  %vm188_vm5 = vcmp.eq.f32.partialorder %v1373_v13, 0.0  ;;  %v1037_v12 = vld [vmem:[#allocation4 + $0x18] sm:$0xff] }
  0x9e   :  { %v1109_v9 = vadd.s32 4294967294, %v575_v54  ;;  %v1654_v51 = vmul.f32 -2.0, %v165_v63  ;;  %v189_v25 = vand.u32 2147483648, %v1373_v13  ;;  %v187_v8 = vsel %vm186_vm4, %v1373_v13, %v185_v16  ;;  %v1041_v20 = vld [vmem:[#allocation4 + $0x38] sm:$0xff] }
  0x9f   :  { %1071 = vst [vmem:[#allocation7 + $0x28] sm:$0xff] %v1067_v37  ;;  %vm499_vm6 = vcmp.eq.s32.totalorder %v497_v21, 0  ;;  %vm502_vm7 = vcmp.eq.s32.totalorder %v497_v21, 2  ;;  %vm921_vm8 = vcmp.eq.s32.totalorder %v916_v10, 2  ;;  %vm918_vm9 = vcmp.eq.s32.totalorder %v916_v10, 0 }
  0xa0   :  { %vm1110_vm3 = vcmp.lt.s32.totalorder %v1109_v9, 0  ;;  %vm496_vm10 = vweird.f32 %v1270_v57  ;;  %vm498_vm11 = vcmp.lt.s32.totalorder %v497_v21, 2  ;;  %vm917_vm12 = vcmp.lt.s32.totalorder %v916_v10, 2 }
  0xa1   :  { %v578_v58 = vsel %vm1110_vm3, 0, %v1109_v9  ;;  %1179 = vrsqrt.f32 %v1654_v51  ;;  %v190_v32 = vsel %vm188_vm5, %v189_v25, %v187_v8  ;;  %v1044_v44 = vmul.f32 0.1, %v1036_v38 }
  0xa2   :  { %v579_v34 = vsub.s32 32, %v578_v58  ;;  %v580_v5 = vshll.u32 %v571_v46, %v578_v58  ;;  %v583_v6 = vsub.s32 4294967266, %v578_v58  ;;  %v1060_v46 = vmul.f32 0.1, %v1040_v39 }
  0xa3   :  { %vm509_vm13 = vcmp.lt.s32.totalorder %v1304_v52, 0  ;;  %v593_v14 = vsub.s32 4, %v1620_v26  ;;  %vm508_vm14 = vcmp.le.f32.partialorder %v507_v24, 0.7853982  ;;  %vm193_vm15 = vcmp.eq.f32.partialorder %v1654_v51, inf }
  0xa4   :  { %v581_v43 = vshrl.u32 %v563_v30, %v579_v34  ;;  %v584_v2 = vadd.s32 127, %v583_v6  ;;  %vm195_vm1 = vcmp.eq.f32.partialorder %v1654_v51, 0.0  ;;  %v1045_v16 = vmul.f32 0.1, %v1037_v12 }
  0xa5   :  { %v594_v61 = vsel %vm509_vm13, %v593_v14, %v1620_v26  ;;  %v196_v26 = vand.u32 2147483648, %v1654_v51  ;;  %v1061_v21 = vmul.f32 0.1, %v1041_v20 }
  0xa6   :  { %v582_v11 = vor.u32 %v581_v43, %v580_v5  ;;  %v585_v17 = vshll.u32 %v584_v2, 23  ;;  %v596_v27 = vsel %vm508_vm14, 0, %v594_v61 }
  0xa7   :  { %v1176_v28 = vpop.eup %1175  ;;  %v1019_v3 = vadd.s32 3, %v596_v27  ;;  %v600_v24 = vand.u32 3, %v596_v27 }
  0xa8   :  { %v1178_v56 = vpop.eup %1177  ;;  %v503_v53 = vxor.u32 2147483648, %v1176_v28  ;;  %v586_v33 = vor.u32 4788187, %v585_v17  ;;  %v589_v35 = vcvt.s32.f32 %v582_v11 }
  0xa9   :  { %v500_v36 = vxor.u32 2147483648, %v1178_v56  ;;  %v1020_v47 = vand.u32 3, %v1019_v3  ;;  %vm605_vm2 = vcmp.eq.s32.totalorder %v600_v24, 2  ;;  %vm602_vm3 = vcmp.eq.s32.totalorder %v600_v24, 0 }
  0xaa   :  { %v504_v41 = vsel %vm502_vm7, %v503_v53, %v1178_v56  ;;  %v587_v60 = vand.u32 2147483647, %v586_v33  ;;  %v923_v62 = vsel %vm921_vm8, %v503_v53, %v1178_v56  ;;  %vm601_vm5 = vcmp.lt.s32.totalorder %v600_v24, 2 }
  0xab   :  { %v501_v29 = vsel %vm499_vm6, %v1176_v28, %v500_v36  ;;  %v920_v42 = vsel %vm918_vm9, %v1176_v28, %v500_v36  ;;  %vm1025_vm0 = vcmp.eq.s32.totalorder %v1020_v47, 2  ;;  %vm1022_vm4 = vcmp.eq.s32.totalorder %v1020_v47, 0 }
  0xac   :  { %v505_v18 = vsel %vm498_vm11, %v501_v29, %v504_v41  ;;  %v590_v45 = vmul.f32 %v589_v35, %v587_v60  ;;  %v924_v15 = vsel %vm917_vm12, %v920_v42, %v923_v62  ;;  %vm1021_vm6 = vcmp.lt.s32.totalorder %v1020_v47, 2 }
  0xad   :  { %v506_v59 = vsel %vm496_vm10, nan, %v505_v18  ;;  %v925_v48 = vsel %vm496_vm10, nan, %v924_v15  ;;  %vm599_vm7 = vweird.f32 %v1304_v52 }
  0xae   :  { %v591_v13 = vxor.u32 2147483648, %v590_v45  ;;  %v612_v23 = vmul.f32 %v506_v59, %v190_v32  ;;  %v1032_v50 = vmul.f32 %v925_v48, %v190_v32  ;;  %v1180_v57 = vpop.eup %1179 }
  0xaf   :  { %v192_v49 = vmul.f32 %v1180_v57, %v1654_v51 }
  0xb0   :  { %v592_v1 = vsel %vm509_vm13, %v591_v13, %v590_v45  ;;  %v1048_v55 = vmul.f32 %v1044_v44, %v612_v23  ;;  %v1064_v19 = vmul.f32 %v1060_v46, %v1032_v50 }
  0xb1   :  { %v595_v40 = vsel %vm508_vm14, %v1304_v52, %v592_v1  ;;  %v194_v0 = vsel %vm193_vm15, %v1654_v51, %v192_v49 }
  0xb2   :  { %1181 = vcosq.f32 %v595_v40  ;;  %v1052_v4 = vadd.f32 %v1048_v55, %v1036_v38  ;;  %v1068_v22 = vadd.f32 %v1064_v19, %v1040_v39  ;;  %v197_v63 = vsel %vm195_vm1, %v196_v26, %v194_v0 }
  0xb3   :  { %1183 = vsinq.f32 %v595_v40 }
  0xb4   :  { %1056 = vst [vmem:[#allocation7 + $0x10] sm:$0xff] %v1052_v4  ;;  %1072 = vst [vmem:[#allocation7 + $0x30] sm:$0xff] %v1068_v22 }
  0xbf   :  { %v1182_v54 = vpop.eup %1181 }
  0xc0   :  { %v1184_v31 = vpop.eup %1183  ;;  %v606_v7 = vxor.u32 2147483648, %v1182_v54 }
  0xc1   :  { %v603_v9 = vxor.u32 2147483648, %v1184_v31 }
  0xc2   :  { %v607_v37 = vsel %vm605_vm2, %v606_v7, %v1184_v31  ;;  %v1027_v30 = vsel %vm1025_vm0, %v606_v7, %v1184_v31 }
  0xc3   :  { %v604_v58 = vsel %vm602_vm3, %v1182_v54, %v603_v9  ;;  %v1024_v34 = vsel %vm1022_vm4, %v1182_v54, %v603_v9 }
  0xc4   :  { %v608_v5 = vsel %vm601_vm5, %v604_v58, %v607_v37  ;;  %v1028_v6 = vsel %vm1021_vm6, %v1024_v34, %v1027_v30 }
  0xc5   :  { %v609_v10 = vsel %vm599_vm7, nan, %v608_v5  ;;  %v1029_v43 = vsel %vm599_vm7, nan, %v1028_v6 }
  0xc6   :  { %v613_v2 = vmul.f32 %v609_v10, %v197_v63  ;;  %v1033_v25 = vmul.f32 %v1029_v43, %v197_v63 }
  0xc8   :  { %v1049_v11 = vmul.f32 %v1045_v16, %v613_v2  ;;  %v1065_v17 = vmul.f32 %v1061_v21, %v1033_v25 }
  0xca   :  { %v1053_v52 = vadd.f32 %v1049_v11, %v1037_v12  ;;  %v1069_v28 = vadd.f32 %v1065_v17, %v1041_v20 }
  0xcc   :  { %1057 = vst [vmem:[#allocation7 + $0x18] sm:$0xff] %v1053_v52  ;;  %1073 = vst [vmem:[#allocation7 + $0x38] sm:$0xff] %v1069_v28 }
  0xcd   :  { %1216 = shalt.err (!%p1213_p9)
}
  0xce   :  { %1085 = dma.vmem_to_hbm [thread:$0]  %s1080_s1, 1024, %s1690_s2, [#allocation6], %s1230_s12, %s1230_s12, %s1231_s13  }
  0xcf   :  { %1227 = dma.done.wait [#allocation6], 1024  }
  0xd0   :  { %1228 = vsyncadd [#allocation6], 4294966272 }
  0xd1   :  { %1089 = vsyncpa [#allocation5], 1 }
  0xd2   :  { %1090 = vsyncpa [#allocation6], 1 }

</bundles_post_ra>
